<compile_context>
chip_gen: v5e
topology: v5e:2x2
jax: 0.10.0
libtpu: 0.0.40
codegen_flags: <defaults>
</compile_context>

<pallas_src>
import functools

import jax
import jax.numpy as jnp
from jax.experimental import pallas as pl
from jax.experimental.pallas import tpu as pltpu

NEG_SLOPE = 0.2                    # LeakyReLU slope used by PyG GATConv
_VMEM_LIMIT = 32 * 1024 * 1024     # explicit scoped-VMEM budget (safe on v5e/v6e/v7x)


def _round_up(x, m):
    return ((x + m - 1) // m) * m


# --------------------------------------------------------------------------------------
# Kernel 1: projection.  h = x @ W (bf16 MXU, f32 acc), alpha = h @ A  -> [:, :H]=a_dst.h,
# [:, H:]=a_src.h.  Tiled over node-row blocks.
# --------------------------------------------------------------------------------------
def _gat_proj_kernel(x_ref, w_ref, a_ref, h_ref, alpha_ref):
    x = x_ref[...].astype(jnp.bfloat16)                    # [TD, Fin]
    w = w_ref[...].astype(jnp.bfloat16)                    # [Fin, H*F]
    h = jnp.dot(x, w, preferred_element_type=jnp.float32)  # [TD, H*F] f32 accumulate
    h_ref[...] = h.astype(jnp.bfloat16)
    a = a_ref[...].astype(jnp.bfloat16)                    # [H*F, 2H]
    alpha_ref[...] = jnp.dot(h.astype(jnp.bfloat16), a,
                             preferred_element_type=jnp.float32)  # [TD, 2H]


# --------------------------------------------------------------------------------------
# Kernel 2: per-dst-tile attention + aggregation.
# --------------------------------------------------------------------------------------
def _gat_attn_kernel(h_ref, adst_ref, asrcT_ref, b_ref, adj_ref, out_ref,
                     *, heads, fout, apply_elu):
    h_all = h_ref[...]                         # [N, H*F] bf16 (resident across grid steps)
    mask = adj_ref[...] > 0                    # [TD, N]  (int8 adjacency tile)
    a_d = adst_ref[...]                        # [TD, H] f32
    a_sT = asrcT_ref[...]                      # [H, N]  f32 (resident)
    bias = b_ref[...]                          # [1, H*F] f32

    for hd in range(heads):
        hh = h_all[:, hd * fout:(hd + 1) * fout]                        # [N, F] bf16
        # e[i, j] = a_dst[i] + a_src[j]  via VPU broadcast-add (no MXU/XLU work)
        e = a_d[:, hd:hd + 1] + a_sT[hd:hd + 1, :]                      # [TD, N]
        # fused LeakyReLU + edge mask; masked logits underflow to 0 after exp
        e = jnp.where(mask, jnp.where(e > 0, e, NEG_SLOPE * e), jnp.float32(-1e30))
        e = e - jnp.max(e, axis=1, keepdims=True)
        p = jnp.exp(e)                                                  # [TD, N]
        inv = pl.reciprocal(jnp.sum(p, axis=1, keepdims=True), approx=True)
        attn = (p * inv).astype(jnp.bfloat16)                           # softmax over src
        out_h = jnp.dot(attn, hh, preferred_element_type=jnp.float32)   # [TD, F]
        out_h = out_h + bias[:, hd * fout:(hd + 1) * fout]
        if apply_elu:
            out_h = jnp.where(out_h > 0, out_h, jnp.exp(out_h) - 1.0)   # F.elu
        out_ref[:, hd * fout:(hd + 1) * fout] = out_h                   # direct per-head store


# --------------------------------------------------------------------------------------
# One GATConv layer (+ optional ELU) on padded inputs.
# --------------------------------------------------------------------------------------
def gat_layer(x_pad, W, a_src, a_dst, bias, adj_i8, *, heads, fout, apply_elu, tile_dst):
    n_pad, fin = x_pad.shape
    hf = heads * fout
    grid = (n_pad // tile_dst,)

    # Block-diagonal attention matrix A: alpha = h @ A, columns [0:H]=a_dst, [H:2H]=a_src.
    eye_h = jnp.eye(heads, dtype=jnp.float32)
    A_dst = (a_dst[:, :, None] * eye_h[:, None, :]).reshape(hf, heads)
    A_src = (a_src[:, :, None] * eye_h[:, None, :]).reshape(hf, heads)
    A = jnp.concatenate([A_dst, A_src], axis=1)                         # [H*F, 2H]

    cparams = pltpu.CompilerParams(dimension_semantics=("parallel",),
                                   vmem_limit_bytes=_VMEM_LIMIT)

    h_all, alpha = pl.pallas_call(
        _gat_proj_kernel,
        out_shape=(jax.ShapeDtypeStruct((n_pad, hf), jnp.bfloat16),
                   jax.ShapeDtypeStruct((n_pad, 2 * heads), jnp.float32)),
        grid=grid,
        in_specs=[pl.BlockSpec((tile_dst, fin), lambda i: (i, 0)),
                  pl.BlockSpec((fin, hf), lambda i: (0, 0)),
                  pl.BlockSpec((hf, 2 * heads), lambda i: (0, 0))],
        out_specs=(pl.BlockSpec((tile_dst, hf), lambda i: (i, 0)),
                   pl.BlockSpec((tile_dst, 2 * heads), lambda i: (i, 0))),
        compiler_params=cparams,
    )(x_pad, W, A)

    a_dst_col = alpha[:, :heads]             # [N, H]
    a_src_row = alpha[:, heads:].T           # [H, N]  (tiny XLA transpose in the wrapper)

    cost = pl.CostEstimate(
        flops=2 * heads * n_pad * n_pad * fout + 6 * heads * n_pad * n_pad,
        transcendentals=heads * n_pad * n_pad,
        bytes_accessed=n_pad * n_pad + 2 * n_pad * hf + 4 * n_pad * hf,
    )

    kernel = functools.partial(_gat_attn_kernel, heads=heads, fout=fout,
                               apply_elu=apply_elu)
    out = pl.pallas_call(
        kernel,
        out_shape=jax.ShapeDtypeStruct((n_pad, hf), jnp.float32),
        grid=grid,
        in_specs=[pl.BlockSpec((n_pad, hf), lambda i: (0, 0)),          # h_all (resident)
                  pl.BlockSpec((tile_dst, heads), lambda i: (i, 0)),    # a_dst tile
                  pl.BlockSpec((heads, n_pad), lambda i: (0, 0)),       # a_src row (resident)
                  pl.BlockSpec((1, hf), lambda i: (0, 0)),              # bias
                  pl.BlockSpec((tile_dst, n_pad), lambda i: (i, 0))],   # int8 adjacency tile
        out_specs=pl.BlockSpec((tile_dst, hf), lambda i: (i, 0)),
        compiler_params=cparams,
        cost_estimate=cost,
    )(h_all, a_dst_col, a_src_row, bias, adj_i8)
    return out


# --------------------------------------------------------------------------------------
# Parameter init (glorot-uniform, matching PyG GATConv parameter shapes).
# --------------------------------------------------------------------------------------
def init_gat_encoder_params(key, in_channels, hidden_channels, out_channels,
                            num_layers=2, heads=8):
    def glorot(k, shape, fan_in, fan_out):
        limit = (6.0 / (fan_in + fan_out)) ** 0.5
        return jax.random.uniform(k, shape, jnp.float32, -limit, limit)

    params = []
    cur = in_channels
    for i in range(num_layers):
        last = (i == num_layers - 1)
        if num_layers == 1 or last:
            h, fout = 1, out_channels            # final layer: heads=1, concat=False
        else:
            h, fout = heads, hidden_channels     # hidden layers: multi-head, concat=True
        key, k1, k2, k3 = jax.random.split(key, 4)
        W = glorot(k1, (cur, h * fout), cur, h * fout)       # lin weight (no bias)
        a_src = glorot(k2, (h, fout), fout, 1)               # att_src
        a_dst = glorot(k3, (h, fout), fout, 1)               # att_dst
        bias = jnp.zeros((1, h * fout), jnp.float32)         # layer bias (zeros init)
        params.append(dict(W=W, a_src=a_src, a_dst=a_dst, bias=bias,
                           heads=h, fout=fout))
        cur = h * fout
    return params


# --------------------------------------------------------------------------------------
# Encoder forward: dense int8 adjacency (self-loops added, as in PyG GATConv default),
# node count padded to a multiple of the destination tile (and of 128 lanes).
# --------------------------------------------------------------------------------------
def gat_encoder_forward(x, edge_index, params, *, tile_dst=None):
    n = x.shape[0]
    if tile_dst is None:
        tile_dst = 512 if n >= 512 else 128
    n_pad = _round_up(max(n, tile_dst), tile_dst)

    src, dst = edge_index[0], edge_index[1]
    adj = jnp.zeros((n_pad, n_pad), jnp.int8).at[dst, src].set(1)
    self_loops = jnp.diag((jnp.arange(n_pad) < n).astype(jnp.int8))
    adj = jnp.maximum(adj, self_loops)                       # self-loops on real nodes

    row_valid = (jnp.arange(n_pad) < n)[:, None]
    x_pad = jnp.zeros((n_pad, x.shape[1]), jnp.float32).at[:n, :].set(x)

    h = x_pad
    for i, p in enumerate(params):
        apply_elu = i < len(params) - 1   # ELU (+ eval-mode identity dropout) between layers
        h = gat_layer(h, p['W'], p['a_src'], p['a_dst'], p['bias'], adj,
                      heads=p['heads'], fout=p['fout'], apply_elu=apply_elu,
                      tile_dst=tile_dst)
        h = jnp.where(row_valid, h, 0.0)  # keep padded rows clean between layers
    return h[:n]


if __name__ == "__main__":
    key = jax.random.PRNGKey(0)
    N, IN_C, HID_C, OUT_C, HEADS, NUM_LAYERS = 16, 8, 8, 8, 4, 2

    kx, ke, kp = jax.random.split(key, 3)
    x = jax.random.normal(kx, (N, IN_C), jnp.float32)

    E = 48
    src = jax.random.randint(ke, (E,), 0, N, dtype=jnp.int32)
    dst = jax.random.randint(jax.random.fold_in(ke, 1), (E,), 0, N, dtype=jnp.int32)
    edge_index = jnp.stack([src, dst], axis=0)               # [2, E]

    params = init_gat_encoder_params(kp, IN_C, HID_C, OUT_C,
                                     num_layers=NUM_LAYERS, heads=HEADS)

    out = gat_encoder_forward(x, edge_index, params)
    out = jax.block_until_ready(out)
    assert out.shape == (N, OUT_C) and out.dtype == jnp.float32
    assert bool(jnp.all(jnp.isfinite(out)))
    print("KERNEL_OK")
</pallas_src>

<mosaic_0001>
module attributes {stable_mosaic.version = 11 : i64} {
  func.func @_gat_proj_kernel(%arg0: i32, %arg1: memref<128x8xf32, #tpu.memory_space<vmem>>, %arg2: memref<8x32xf32, #tpu.memory_space<vmem>>, %arg3: memref<32x8xf32, #tpu.memory_space<vmem>>, %arg4: memref<128x32xbf16, #tpu.memory_space<vmem>>, %arg5: memref<128x8xf32, #tpu.memory_space<vmem>>) attributes {dimension_semantics = [#tpu.dimension_semantics<parallel>], iteration_bounds = array<i64: 1>, scalar_prefetch = 0 : i64, scratch_operands = 0 : i64, tpu.core_type = #tpu.core_type<tc>, window_params = [{transform_indices = @transform_0, window_bounds = array<i64: 128, 8>}, {pipeline_mode = #tpu.pipeline_mode<synchronous>, transform_indices = @transform_1, window_bounds = array<i64: 8, 32>}, {pipeline_mode = #tpu.pipeline_mode<synchronous>, transform_indices = @transform_2, window_bounds = array<i64: 32, 8>}, {transform_indices = @transform_3, window_bounds = array<i64: 128, 32>}, {transform_indices = @transform_4, window_bounds = array<i64: 128, 8>}]} {
    %c0 = arith.constant 0 : index
    %c0_0 = arith.constant 0 : index
    %0 = vector.load %arg1[%c0, %c0_0] : memref<128x8xf32, #tpu.memory_space<vmem>>, vector<128x8xf32>
    %1 = arith.truncf %0 : vector<128x8xf32> to vector<128x8xbf16>
    %c0_1 = arith.constant 0 : index
    %c0_2 = arith.constant 0 : index
    %2 = vector.load %arg2[%c0_1, %c0_2] : memref<8x32xf32, #tpu.memory_space<vmem>>, vector<8x32xf32>
    %3 = arith.truncf %2 : vector<8x32xf32> to vector<8x32xbf16>
    %cst = arith.constant dense<0.000000e+00> : vector<128x32xf32>
    %4 = tpu.matmul %1, %3, %cst {dimension_numbers = #tpu.dot_dimension_numbers<[1], [0], [0], [1], [0, 0, 1, 1], [], []>} : vector<128x8xbf16>, vector<8x32xbf16>, vector<128x32xf32> -> vector<128x32xf32>
    %5 = arith.truncf %4 : vector<128x32xf32> to vector<128x32xbf16>
    %c0_3 = arith.constant 0 : index
    %c0_4 = arith.constant 0 : index
    %6 = vector.load %arg4[%c0_3, %c0_4] : memref<128x32xbf16, #tpu.memory_space<vmem>>, vector<128x32xbf16>
    tpu.vector_store %arg4[%c0_3, %c0_4], %5 {strides = array<i32>} : memref<128x32xbf16, #tpu.memory_space<vmem>>, vector<128x32xbf16>,
    %c0_5 = arith.constant 0 : index
    %c0_6 = arith.constant 0 : index
    %7 = vector.load %arg3[%c0_5, %c0_6] : memref<32x8xf32, #tpu.memory_space<vmem>>, vector<32x8xf32>
    %8 = arith.truncf %7 : vector<32x8xf32> to vector<32x8xbf16>
    %9 = arith.truncf %4 : vector<128x32xf32> to vector<128x32xbf16>
    %cst_7 = arith.constant dense<0.000000e+00> : vector<128x8xf32>
    %10 = tpu.matmul %9, %8, %cst_7 {dimension_numbers = #tpu.dot_dimension_numbers<[1], [0], [0], [1], [0, 0, 1, 1], [], []>} : vector<128x32xbf16>, vector<32x8xbf16>, vector<128x8xf32> -> vector<128x8xf32>
    %c0_8 = arith.constant 0 : index
    %c0_9 = arith.constant 0 : index
    %11 = vector.load %arg5[%c0_8, %c0_9] : memref<128x8xf32, #tpu.memory_space<vmem>>, vector<128x8xf32>
    tpu.vector_store %arg5[%c0_8, %c0_9], %10 {strides = array<i32>} : memref<128x8xf32, #tpu.memory_space<vmem>>, vector<128x8xf32>,
    return
  }
  func.func @transform_0(%arg0: i32) -> (i32, i32) {
    %c0_i32 = arith.constant 0 : i32
    %c0_i32_0 = arith.constant 0 : i32
    return %arg0, %c0_i32 : i32, i32
  }
  func.func @transform_1(%arg0: i32) -> (i32, i32) {
    %c0_i32 = arith.constant 0 : i32
    %c0_i32_0 = arith.constant 0 : i32
    %c0_i32_1 = arith.constant 0 : i32
    return %c0_i32, %c0_i32_0 : i32, i32
  }
  func.func @transform_2(%arg0: i32) -> (i32, i32) {
    %c0_i32 = arith.constant 0 : i32
    %c0_i32_0 = arith.constant 0 : i32
    %c0_i32_1 = arith.constant 0 : i32
    return %c0_i32, %c0_i32_0 : i32, i32
  }
  func.func @transform_3(%arg0: i32) -> (i32, i32) {
    %c0_i32 = arith.constant 0 : i32
    %c0_i32_0 = arith.constant 0 : i32
    return %arg0, %c0_i32 : i32, i32
  }
  func.func @transform_4(%arg0: i32) -> (i32, i32) {
    %c0_i32 = arith.constant 0 : i32
    %c0_i32_0 = arith.constant 0 : i32
    return %arg0, %c0_i32 : i32, i32
  }
}

</mosaic_0001>

<bundles_post_ra>
// kernel: tpu_custom_call.1
= control target key start
LH: loop header
LB: loop body
LE: loop exit
PB: predicated region body
PF: predicated region fallthrough
CT: control target
= control target key end

     0   :  { %vm68_vm0 = vcmask 1043456   ;;  %vm43_vm1 = vcmask 64512   ;;  %vm137_vm2 = vcmask 257024   ;;  %vm200_vm3 = vcmask 261120   ;;  %s549_s1 = inlined_call_operand.vmem [shape: f32[8,32], index: 1, kind: input, shape index: {}]   ;;  %s550_s0 = inlined_call_operand.vmem [shape: f32[128,8], index: 0, kind: input, shape index: {}]   ;;  %s551_s2 = inlined_call_operand.vmem [shape: f32[32,8], index: 2, kind: input, shape index: {}]   ;;  %s552_s3 = inlined_call_operand.vmem [shape: bf16[128,32], index: 3, kind: output, shape index: {0}]   ;;  %s553_s4 = inlined_call_operand.vmem [shape: f32[128,8], index: 4, kind: output, shape index: {1}]  }
   0x1   :  { %v41_v0 = vld [vmem:[%s549_s1] sm:$0xff]  ;;  %v18_v2 = vld [vmem:[%s550_s0 + $0x8] sm:$0xff]  ;;  %v19_v6 = vld [vmem:[%s550_s0 + $0x10] sm:$0xff] }
   0x2   :  { %v17_v1 = vld [vmem:[%s550_s0] sm:$0xff]  ;;  %v42_v3 = vpack.c.bf16 %v41_v0, %v41_v0  ;;  %v20_v7 = vld [vmem:[%s550_s0 + $0x18] sm:$0xff]  ;;  %v22_v10 = vld [vmem:[%s550_s0 + $0x28] sm:$0xff] }
   0x3   :  { %v33_v5 = vpack.c.bf16 %v18_v2, %v17_v1  ;;  %v34_v8 = vpack.c.bf16 %v20_v7, %v19_v6  ;;  %v21_v9 = vld [vmem:[%s550_s0 + $0x20] sm:$0xff]  ;;  %v27_v12 = vld [vmem:[%s550_s0 + $0x50] sm:$0xff]  ;;  %v28_v13 = vld [vmem:[%s550_s0 + $0x58] sm:$0xff] }
   0x4   :  { %v70_v4 = vsel %vm68_vm0, %v42_v3, 0  ;;  %v35_v11 = vpack.c.bf16 %v22_v10, %v21_v9  ;;  %v38_v14 = vpack.c.bf16 %v28_v13, %v27_v12  ;;  %v23_v15 = vld [vmem:[%s550_s0 + $0x30] sm:$0xff]  ;;  %v24_v16 = vld [vmem:[%s550_s0 + $0x38] sm:$0xff]  ;;  %v29_v17 = vld [vmem:[%s550_s0 + $0x60] sm:$0xff] }
   0x5   :  { %79 = vmatpush.bf16.msra.mxu0 %v70_v4  ;;  %314 = vmatpush.bf16.msra.mxu3 %v70_v4  ;;  %v30_v18 = vld [vmem:[%s550_s0 + $0x68] sm:$0xff]  ;;  %v36_v19 = vpack.c.bf16 %v24_v16, %v23_v15  ;;  %v25_v21 = vld [vmem:[%s550_s0 + $0x40] sm:$0xff]  ;;  %v31_v23 = vld [vmem:[%s550_s0 + $0x70] sm:$0xff] }
   0x6   :  { %v39_v20 = vpack.c.bf16 %v30_v18, %v29_v17  ;;  %v26_v22 = vld [vmem:[%s550_s0 + $0x48] sm:$0xff]  ;;  %v32_v24 = vld [vmem:[%s550_s0 + $0x78] sm:$0xff]  ;;  %v156_v27 = vld [vmem:[%s551_s2 + $0x10] sm:$0xff] }
   0x7   :  { %v37_v25 = vpack.c.bf16 %v26_v22, %v25_v21  ;;  %v40_v26 = vpack.c.bf16 %v32_v24, %v31_v23  ;;  %v157_v28 = vld [vmem:[%s551_s2 + $0x18] sm:$0xff]  ;;  %v154_v30 = vld [vmem:[%s551_s2] sm:$0xff]  ;;  %v155_v31 = vld [vmem:[%s551_s2 + $0x8] sm:$0xff] }
   0x8   :  { %298 = vmatmul.msk.bf16.vlgmr.msra.gmra.mxu0 %vm43_vm1, %v33_v5  ;;  %303 = vmatmul.msk.bf16.vlgmr.msra.gmra.mxu3 %vm43_vm1, %v38_v14  ;;  %v159_v29 = vpack.c.bf16 %v157_v28, %v156_v27  ;;  %v158_v32 = vpack.c.bf16 %v155_v31, %v154_v30 }
   0xa   :  { %231 = vmatpush.bf16.msra.mxu1 %v159_v29  ;;  %315 = vmatpush.bf16.msra.mxu2 %v159_v29 }
   0xe   :  { %232 = vmatpush.bf16.msra.mxu1 %v158_v32  ;;  %316 = vmatpush.bf16.msra.mxu2 %v158_v32 }
  0x18   :  { %299 = vmatmul.msk.bf16.gmra.mxu0 %vm43_vm1, %v34_v8  ;;  %304 = vmatmul.msk.bf16.gmra.mxu3 %vm43_vm1, %v39_v20 }
  0x28   :  { %300 = vmatmul.msk.bf16.gmra.mxu0 %vm43_vm1, %v35_v11  ;;  %305 = vmatmul.msk.bf16.gmra.mxu3 %vm43_vm1, %v40_v26 }
  0x38   :  { %301 = vmatmul.msk.bf16.gmra.mxu0 %vm43_vm1, %v36_v19 }
  0x48   :  { %302 = vmatmul.msk.bf16.gmra.mxu0 %vm43_vm1, %v37_v25 }
  0x85   :  { %v81_v33 = vpop.f32.mrf.mxu0 }
  0x86   :  { %v121_v34 = vpack.c.bf16 %v81_v33, %v81_v33 }
  0x88   :  { %138 = vst.msk [vmem:[%s552_s3] sm:$0xf] %vm137_vm2, %v121_v34  ;;  %v176_v37 = vunpack.c.l.b16 %v121_v34 }
  0x8b   :  { %v106_v50 = vpop.f32.mrf.mxu3 }
  0x8c   :  { %v131_v55 = vpack.c.bf16 %v106_v50, %v106_v50 }
  0x8d   :  { %v83_v35 = vpop.f32.mrf.mxu0 }
  0x8e   :  { %v122_v36 = vpack.c.bf16 %v83_v35, %v83_v35  ;;  %148 = vst.msk [vmem:[%s552_s3 + $0x28] sm:$0xf] %vm137_vm2, %v131_v55  ;;  %v186_v16 = vunpack.c.l.b16 %v131_v55 }
  0x90   :  { %139 = vst.msk [vmem:[%s552_s3 + $0x4] sm:$0xf] %vm137_vm2, %v122_v36  ;;  %v177_v38 = vunpack.c.l.b16 %v122_v36 }
  0x92   :  { %v192_v39 = vpack.c.b16 %v177_v38, %v176_v37 }
  0x93   :  { %v108_v57 = vpop.f32.mrf.mxu3 }
  0x94   :  { %306 = vmatmul.msk.bf16.vlgmr.msra.gmra.mxu1 %vm200_vm3, %v192_v39  ;;  %v132_v59 = vpack.c.bf16 %v108_v57, %v108_v57 }
  0x95   :  { %v86_v40 = vpop.f32.mrf.mxu0 }
  0x96   :  { %v123_v41 = vpack.c.bf16 %v86_v40, %v86_v40  ;;  %149 = vst.msk [vmem:[%s552_s3 + $0x2c] sm:$0xf] %vm137_vm2, %v132_v59  ;;  %v187_v17 = vunpack.c.l.b16 %v132_v59 }
  0x98   :  { %140 = vst.msk [vmem:[%s552_s3 + $0x8] sm:$0xf] %vm137_vm2, %v123_v41  ;;  %v178_v44 = vunpack.c.l.b16 %v123_v41  ;;  %v197_v18 = vpack.c.b16 %v187_v17, %v186_v16 }
  0x9b   :  { %v111_v61 = vpop.f32.mrf.mxu3 }
  0x9c   :  { %v133_v63 = vpack.c.bf16 %v111_v61, %v111_v61 }
  0x9d   :  { %v88_v42 = vpop.f32.mrf.mxu0 }
  0x9e   :  { %v124_v43 = vpack.c.bf16 %v88_v42, %v88_v42  ;;  %150 = vst.msk [vmem:[%s552_s3 + $0x30] sm:$0xf] %vm137_vm2, %v133_v63  ;;  %v188_v19 = vunpack.c.l.b16 %v133_v63 }
  0xa0   :  { %141 = vst.msk [vmem:[%s552_s3 + $0xc] sm:$0xf] %vm137_vm2, %v124_v43  ;;  %v179_v45 = vunpack.c.l.b16 %v124_v43 }
  0xa2   :  { %v193_v46 = vpack.c.b16 %v179_v45, %v178_v44 }
  0xa3   :  { %v113_v4 = vpop.f32.mrf.mxu3 }
  0xa4   :  { %307 = vmatmul.msk.bf16.gmra.mxu1 %vm200_vm3, %v193_v46  ;;  %v134_v6 = vpack.c.bf16 %v113_v4, %v113_v4 }
  0xa5   :  { %v91_v47 = vpop.f32.mrf.mxu0 }
  0xa6   :  { %v125_v48 = vpack.c.bf16 %v91_v47, %v91_v47  ;;  %151 = vst.msk [vmem:[%s552_s3 + $0x34] sm:$0xf] %vm137_vm2, %v134_v6  ;;  %v189_v20 = vunpack.c.l.b16 %v134_v6 }
  0xa8   :  { %142 = vst.msk [vmem:[%s552_s3 + $0x10] sm:$0xf] %vm137_vm2, %v125_v48  ;;  %v180_v52 = vunpack.c.l.b16 %v125_v48  ;;  %v198_v21 = vpack.c.b16 %v189_v20, %v188_v19 }
  0xab   :  { %v116_v8 = vpop.f32.mrf.mxu3 }
  0xac   :  { %v135_v10 = vpack.c.bf16 %v116_v8, %v116_v8 }
  0xad   :  { %v93_v49 = vpop.f32.mrf.mxu0 }
  0xae   :  { %v126_v51 = vpack.c.bf16 %v93_v49, %v93_v49  ;;  %152 = vst.msk [vmem:[%s552_s3 + $0x38] sm:$0xf] %vm137_vm2, %v135_v10  ;;  %v190_v22 = vunpack.c.l.b16 %v135_v10 }
  0xb0   :  { %143 = vst.msk [vmem:[%s552_s3 + $0x14] sm:$0xf] %vm137_vm2, %v126_v51  ;;  %v181_v53 = vunpack.c.l.b16 %v126_v51 }
  0xb2   :  { %v194_v54 = vpack.c.b16 %v181_v53, %v180_v52 }
  0xb3   :  { %v118_v14 = vpop.f32.mrf.mxu3 }
  0xb4   :  { %308 = vmatmul.msk.bf16.gmra.mxu1 %vm200_vm3, %v194_v54  ;;  %v136_v15 = vpack.c.bf16 %v118_v14, %v118_v14 }
  0xb5   :  { %v96_v56 = vpop.f32.mrf.mxu0 }
  0xb6   :  { %v127_v58 = vpack.c.bf16 %v96_v56, %v96_v56  ;;  %153 = vst.msk [vmem:[%s552_s3 + $0x3c] sm:$0xf] %vm137_vm2, %v136_v15  ;;  %v191_v23 = vunpack.c.l.b16 %v136_v15 }
  0xb8   :  { %144 = vst.msk [vmem:[%s552_s3 + $0x18] sm:$0xf] %vm137_vm2, %v127_v58  ;;  %v182_v0 = vunpack.c.l.b16 %v127_v58  ;;  %v199_v24 = vpack.c.b16 %v191_v23, %v190_v22 }
  0xbd   :  { %v98_v60 = vpop.f32.mrf.mxu0 }
  0xbe   :  { %v128_v62 = vpack.c.bf16 %v98_v60, %v98_v60 }
  0xc0   :  { %145 = vst.msk [vmem:[%s552_s3 + $0x1c] sm:$0xf] %vm137_vm2, %v128_v62  ;;  %v183_v1 = vunpack.c.l.b16 %v128_v62 }
  0xc2   :  { %v195_v2 = vpack.c.b16 %v183_v1, %v182_v0 }
  0xc4   :  { %309 = vmatmul.msk.bf16.gmra.mxu1 %vm200_vm3, %v195_v2 }
  0xc5   :  { %v101_v3 = vpop.f32.mrf.mxu0 }
  0xc6   :  { %v129_v5 = vpack.c.bf16 %v101_v3, %v101_v3 }
  0xc8   :  { %146 = vst.msk [vmem:[%s552_s3 + $0x20] sm:$0xf] %vm137_vm2, %v129_v5  ;;  %v184_v11 = vunpack.c.l.b16 %v129_v5 }
  0xcd   :  { %v103_v7 = vpop.f32.mrf.mxu0 }
  0xce   :  { %v130_v9 = vpack.c.bf16 %v103_v7, %v103_v7 }
  0xd0   :  { %147 = vst.msk [vmem:[%s552_s3 + $0x24] sm:$0xf] %vm137_vm2, %v130_v9  ;;  %v185_v12 = vunpack.c.l.b16 %v130_v9 }
  0xd2   :  { %v196_v13 = vpack.c.b16 %v185_v12, %v184_v11 }
  0xd4   :  { %310 = vmatmul.msk.bf16.vlgmr.msra.gmra.mxu2 %vm200_vm3, %v196_v13 }
  0xe4   :  { %311 = vmatmul.msk.bf16.gmra.mxu2 %vm200_vm3, %v197_v18 }
  0xf4   :  { %312 = vmatmul.msk.bf16.gmra.mxu2 %vm200_vm3, %v198_v21 }
 0x104   :  { %313 = vmatmul.msk.bf16.gmra.mxu2 %vm200_vm3, %v199_v24 }
 0x111   :  { %v234_v25 = vpop.f32.mrf.mxu1 }
 0x112   :  { %274 = vst.msk [vmem:[%s553_s4] sm:$0xff] %vm43_vm1, %v234_v25 }
 0x119   :  { %v236_v26 = vpop.f32.mrf.mxu1 }
 0x11a   :  { %275 = vst.msk [vmem:[%s553_s4 + $0x8] sm:$0xff] %vm43_vm1, %v236_v26 }
 0x121   :  { %v239_v27 = vpop.f32.mrf.mxu1 }
 0x122   :  { %276 = vst.msk [vmem:[%s553_s4 + $0x10] sm:$0xff] %vm43_vm1, %v239_v27 }
 0x129   :  { %v241_v28 = vpop.f32.mrf.mxu1 }
 0x12a   :  { %277 = vst.msk [vmem:[%s553_s4 + $0x18] sm:$0xff] %vm43_vm1, %v241_v28 }
 0x131   :  { %v244_v29 = vpop.f32.mrf.mxu1 }
 0x132   :  { %278 = vst.msk [vmem:[%s553_s4 + $0x20] sm:$0xff] %vm43_vm1, %v244_v29 }
 0x139   :  { %v246_v30 = vpop.f32.mrf.mxu1 }
 0x13a   :  { %279 = vst.msk [vmem:[%s553_s4 + $0x28] sm:$0xff] %vm43_vm1, %v246_v30 }
 0x141   :  { %v249_v31 = vpop.f32.mrf.mxu1 }
 0x142   :  { %280 = vst.msk [vmem:[%s553_s4 + $0x30] sm:$0xff] %vm43_vm1, %v249_v31 }
 0x149   :  { %v251_v32 = vpop.f32.mrf.mxu1 }
 0x14a   :  { %281 = vst.msk [vmem:[%s553_s4 + $0x38] sm:$0xff] %vm43_vm1, %v251_v32 }
 0x157   :  { %v254_v33 = vpop.f32.mrf.mxu2 }
 0x158   :  { %282 = vst.msk [vmem:[%s553_s4 + $0x40] sm:$0xff] %vm43_vm1, %v254_v33 }
 0x15f   :  { %v256_v34 = vpop.f32.mrf.mxu2 }
 0x160   :  { %283 = vst.msk [vmem:[%s553_s4 + $0x48] sm:$0xff] %vm43_vm1, %v256_v34 }
 0x167   :  { %v259_v35 = vpop.f32.mrf.mxu2 }
 0x168   :  { %284 = vst.msk [vmem:[%s553_s4 + $0x50] sm:$0xff] %vm43_vm1, %v259_v35 }
 0x16f   :  { %v261_v36 = vpop.f32.mrf.mxu2 }
 0x170   :  { %285 = vst.msk [vmem:[%s553_s4 + $0x58] sm:$0xff] %vm43_vm1, %v261_v36 }
 0x177   :  { %v264_v37 = vpop.f32.mrf.mxu2 }
 0x178   :  { %286 = vst.msk [vmem:[%s553_s4 + $0x60] sm:$0xff] %vm43_vm1, %v264_v37 }
 0x17f   :  { %v266_v38 = vpop.f32.mrf.mxu2 }
 0x180   :  { %287 = vst.msk [vmem:[%s553_s4 + $0x68] sm:$0xff] %vm43_vm1, %v266_v38 }
 0x187   :  { %v269_v39 = vpop.f32.mrf.mxu2 }
 0x188   :  { %288 = vst.msk [vmem:[%s553_s4 + $0x70] sm:$0xff] %vm43_vm1, %v269_v39 }
 0x18f   :  { %v271_v40 = vpop.f32.mrf.mxu2 }
 0x190   :  { %289 = vst.msk [vmem:[%s553_s4 + $0x78] sm:$0xff] %vm43_vm1, %v271_v40 }

</bundles_post_ra>
